<compile_context>
chip_gen: v7x
topology: tpu7x:2x2x1
jax: 0.10.0
libtpu: 0.0.40
codegen_flags: <defaults>
</compile_context>

<pallas_src>
import jax
import jax.numpy as jnp
from jax.experimental import pallas as pl
from jax.experimental.pallas import tpu as pltpu


def _linear_kernel(x_ref, w_ref, b_ref, o_ref):
    """y = x @ W^T + b with W kept in (N, K) layout (K on the lane axis).

    Computed on the VPU (broadcast multiply) + XLU (lane reduce): with only
    6 output classes the MXU stationary-weight fills would be >95% padding,
    so the vector path is both cheaper and keeps every DMA lane-dense.
    """
    x = x_ref[...]                              # (B, K) f32
    w = w_ref[...].astype(jnp.float32)          # (N, K) bf16 -> f32 (cast on load)
    prod = x[:, None, :] * w[None, :, :]        # (B, N, K) f32, VPU
    y = jnp.sum(prod, axis=-1) + b_ref[...]     # (B, N) f32, XLU lane-reduce
    o_ref[...] = y.astype(o_ref.dtype)


def prepare_linear_params(weight, bias):
    """One-time parameter setup (off the per-call forward path).

    weight : (num_classes, input_size) f32 — PyTorch nn.Linear convention.
             Kept in this (N, K) layout (NOT transposed) so K stays on the
             128-lane axis; stored as bf16 to halve the dominant weight DMA.
    bias   : (num_classes,) f32
    returns: weight_bf16 (N, K) bfloat16, bias2 (1, N) float32
    """
    w = jnp.asarray(weight).astype(jnp.bfloat16)
    b = jnp.asarray(bias, dtype=jnp.float32).reshape(1, -1)
    return w, b


@jax.jit
def linear_net_forward(x_nchw, weight_bf16, bias2):
    """Pallas implementation of LinearNet.forward.

    x_nchw      : (B, C, H, W) float32
    weight_bf16 : (num_classes, input_size) bfloat16  (original layout, bf16)
    bias2       : (1, num_classes) float32
    returns     : (B, num_classes) float32
    """
    B = x_nchw.shape[0]
    x = x_nchw.reshape(B, -1)               # flatten, same as x.view(B, -1)
    N, K = weight_bf16.shape
    assert x.shape[1] == K, "flattened input size must match weight"

    cost = pl.CostEstimate(
        flops=2 * B * K * N,
        transcendentals=0,
        bytes_accessed=(x.size * x.dtype.itemsize
                        + weight_bf16.size * weight_bf16.dtype.itemsize
                        + bias2.size * bias2.dtype.itemsize
                        + B * N * 4),
    )

    # Single gridless step: all operands resident in VMEM at once (~50 KiB),
    # far below any generation's scoped-VMEM limit.
    return pl.pallas_call(
        _linear_kernel,
        out_shape=jax.ShapeDtypeStruct((B, N), jnp.float32),
        in_specs=[
            pl.BlockSpec(memory_space=pltpu.MemorySpace.VMEM),  # x      (B, K)
            pl.BlockSpec(memory_space=pltpu.MemorySpace.VMEM),  # weight (N, K) bf16
            pl.BlockSpec(memory_space=pltpu.MemorySpace.VMEM),  # bias   (1, N)
        ],
        out_specs=pl.BlockSpec(memory_space=pltpu.MemorySpace.VMEM),
        cost_estimate=cost,
    )(x, weight_bf16, bias2)


if __name__ == "__main__":
    input_size = 1 * 48 * 48
    num_classes = 6
    batch = 2

    key = jax.random.PRNGKey(0)
    kx, kw, kb = jax.random.split(key, 3)

    # Deterministic inputs / parameters (same shapes as torch.nn.Linear(2304, 6)).
    x = jax.random.normal(kx, (batch, 1, 48, 48), dtype=jnp.float32)
    bound = 1.0 / (input_size ** 0.5)
    weight = jax.random.uniform(
        kw, (num_classes, input_size), dtype=jnp.float32, minval=-bound, maxval=bound
    )
    bias = jax.random.uniform(
        kb, (num_classes,), dtype=jnp.float32, minval=-bound, maxval=bound
    )

    # One-time parameter layout / dtype setup (not on the per-call path).
    w_prep, b_prep = prepare_linear_params(weight, bias)

    y = linear_net_forward(x, w_prep, b_prep)
    y = jax.block_until_ready(y)

    # Reference check: same math as the PyTorch forward, using the same
    # bf16-rounded weights the kernel consumes (f32 accumulation).
    w_ref = w_prep.astype(jnp.float32)
    y_ref = x.reshape(batch, -1) @ w_ref.T + bias
    assert y.shape == (batch, num_classes)
    assert jnp.allclose(y, y_ref, atol=1e-4, rtol=1e-4)

    print("KERNEL_OK")
</pallas_src>

<mosaic_0001>
module attributes {stable_mosaic.version = 11 : i64} {
  func.func @_linear_kernel(%arg0: memref<2x2304xf32, #tpu.memory_space<vmem>>, %arg1: memref<6x2304xbf16, #tpu.memory_space<vmem>>, %arg2: memref<1x6xf32, #tpu.memory_space<vmem>>, %arg3: memref<2x6xf32, #tpu.memory_space<vmem>>) attributes {dimension_semantics = [], scalar_prefetch = 0 : i64, scratch_operands = 0 : i64, tpu.core_type = #tpu.core_type<tc>} {
    %c0 = arith.constant 0 : index
    %c0_0 = arith.constant 0 : index
    %0 = vector.load %arg0[%c0, %c0_0] : memref<2x2304xf32, #tpu.memory_space<vmem>>, vector<2x2304xf32>
    %c0_1 = arith.constant 0 : index
    %c0_2 = arith.constant 0 : index
    %1 = vector.load %arg1[%c0_1, %c0_2] : memref<6x2304xbf16, #tpu.memory_space<vmem>>, vector<6x2304xbf16>
    %2 = arith.extf %1 : vector<6x2304xbf16> to vector<6x2304xf32>
    %3 = vector.shape_cast %0 : vector<2x2304xf32> to vector<2x1x2304xf32>
    %4 = vector.shape_cast %2 : vector<6x2304xf32> to vector<1x6x2304xf32>
    %5 = vector.broadcast %3 : vector<2x1x2304xf32> to vector<2x6x2304xf32>
    %6 = vector.broadcast %4 : vector<1x6x2304xf32> to vector<2x6x2304xf32>
    %7 = arith.mulf %5, %6 : vector<2x6x2304xf32>
    %cst = arith.constant dense<0.000000e+00> : vector<2x6xf32>
    %8 = vector.multi_reduction <add>, %7, %cst [2] : vector<2x6x2304xf32> to vector<2x6xf32>
    %c0_3 = arith.constant 0 : index
    %c0_4 = arith.constant 0 : index
    %9 = vector.load %arg2[%c0_3, %c0_4] : memref<1x6xf32, #tpu.memory_space<vmem>>, vector<1x6xf32>
    %10 = vector.broadcast %9 : vector<1x6xf32> to vector<2x6xf32>
    %11 = arith.addf %8, %10 : vector<2x6xf32>
    %c0_5 = arith.constant 0 : index
    %c0_6 = arith.constant 0 : index
    %12 = vector.load %arg3[%c0_5, %c0_6] : memref<2x6xf32, #tpu.memory_space<vmem>>, vector<2x6xf32>
    tpu.vector_store %arg3[%c0_5, %c0_6], %11 {strides = array<i32>} : memref<2x6xf32, #tpu.memory_space<vmem>>, vector<2x6xf32>,
    return
  }
}

</mosaic_0001>

<bundles_post_ra>
// kernel: linear_net_forward.1
= control target key start
LH: loop header
LB: loop body
LE: loop exit
PB: predicated region body
PF: predicated region fallthrough
CT: control target
= control target key end

     0   :  { %v92_v0 = vlaneseq  ;;  %s794_s0 = inlined_call_operand.vmem [shape: f32[2,2304], index: 0, kind: input, shape index: {}]   ;;  %s795_s1 = inlined_call_operand.vmem [shape: bf16[6,2304], index: 1, kind: input, shape index: {}]   ;;  %s796_s2 = inlined_call_operand.vmem [shape: f32[1,6], index: 2, kind: input, shape index: {}]   ;;  %s797_s3 = inlined_call_operand.hbm [shape: f32[2,6], index: 3, kind: output, shape index: {}]  }
   0x1   :  { %v437_v1 = vld [vmem:[%s796_s2] ss:$0 sm:$0xff] }
   0x2   :  { %390 = vbcast.lane.b32.xlu1 %v437_v1, 256 }
   0x3   :  { %8 = vsyncpa [#allocation3], 0  ;;  %v432_v2 = vld.sshfl [vmem:[%s794_s0] sm:$0xff pattern:$0x75316420]  ;;  %v498_v4 = vshrl.u32 %v92_v0, 7 }
   0x4   :  { %v433_v3 = vld.sshfl [vmem:[%s794_s0 + $0x8] sm:$0xff pattern:$0x75316420]  ;;  %v503_v5 = vld [vmem:[%s795_s1] sm:$0x77]  ;;  %vm308_vm0 = vcmask 1045504  }
   0x5   :  { %v505_v6 = vcombine.low %v432_v2, %v433_v3  ;;  %v508_v7 = vsub.s32 0, %v498_v4  ;;  %v511_v8 = vsub.s32 1, %v498_v4  ;;  %v514_v9 = vsub.s32 2, %v498_v4  ;;  %v519_v10 = vld [vmem:[%s795_s1 + $0x8] sm:$0x77] }
   0x6   :  { %v522_v11 = vsub.s32 3, %v498_v4  ;;  %v29_v12 = vunpack.c.l.bf16 %v503_v5  ;;  %v528_v13 = vld [vmem:[%s795_s1 + $0x10] sm:$0x77]  ;;  %v30_v14 = vunpack.c.h.bf16 %v503_v5  ;;  %v536_v17 = vsub.s32 4, %v498_v4  ;;  %v557_v26 = vld [vmem:[%s795_s1 + $0x18] sm:$0x77] }
   0x7   :  { %v95_v15 = vrot.slane %v505_v6, %v508_v7  ;;  %v99_v16 = vrot.slane %v505_v6, %v511_v8  ;;  %v31_v18 = vunpack.c.l.bf16 %v519_v10  ;;  %v103_v19 = vrot.slane %v505_v6, %v514_v9  ;;  %v434_v23 = vld.sshfl [vmem:[%s794_s0 + $0x10] sm:$0xff pattern:$0x75316420]  ;;  %v435_v25 = vld.sshfl [vmem:[%s794_s0 + $0x18] sm:$0xff pattern:$0x75316420] }
   0x8   :  { %v32_v20 = vunpack.c.h.bf16 %v519_v10  ;;  %v107_v21 = vrot.slane %v505_v6, %v522_v11  ;;  %v545_v22 = vsub.s32 5, %v498_v4  ;;  %v33_v24 = vunpack.c.l.bf16 %v528_v13  ;;  %v581_v36 = vld [vmem:[%s795_s1 + $0x20] sm:$0x77]  ;;  %v591_v40 = vld [vmem:[%s795_s1 + $0x28] sm:$0x77] }
   0x9   :  { %v111_v27 = vrot.slane %v505_v6, %v536_v17  ;;  %v562_v28 = vsub.s32 6, %v498_v4  ;;  %v272_v29 = vmul.f32 %v95_v15, %v29_v12  ;;  %v273_v30 = vmul.f32 %v99_v16, %v30_v14  ;;  %v602_v45 = vld [vmem:[%s795_s1 + $0x30] sm:$0x77]  ;;  %v620_v58 = vld [vmem:[%s795_s1 + $0x38] sm:$0x77] }
   0xa   :  { %v274_v31 = vmul.f32 %v103_v19, %v31_v18  ;;  %v34_v32 = vunpack.c.h.bf16 %v528_v13  ;;  %v115_v33 = vrot.slane %v505_v6, %v545_v22  ;;  %v574_v34 = vsub.s32 7, %v498_v4  ;;  %v625_v59 = vld [vmem:[%s795_s1 + $0x40] sm:$0x77] }
   0xb   :  { %v275_v35 = vmul.f32 %v107_v21, %v32_v20  ;;  %v35_v37 = vunpack.c.l.bf16 %v557_v26  ;;  %v584_v38 = vcombine.high %v432_v2, %v433_v3  ;;  %v586_v39 = vcombine.low %v434_v23, %v435_v25 }
   0xc   :  { %v119_v41 = vrot.slane %v505_v6, %v562_v28  ;;  %v276_v42 = vmul.f32 %v111_v27, %v33_v24  ;;  %v309_v43 = vsel %vm308_vm0, %v272_v29, 0.0  ;;  %v310_v44 = vsel %vm308_vm0, %v273_v30, 0.0 }
   0xd   :  { %v36_v46 = vunpack.c.h.bf16 %v557_v26  ;;  %v311_v47 = vadd.f32 %v310_v44, %v309_v43  ;;  %v312_v48 = vsel %vm308_vm0, %v274_v31, 0.0  ;;  %v606_v49 = vcombine.high %v434_v23, %v435_v25 }
   0xe   :  { %v37_v50 = vunpack.c.l.bf16 %v581_v36  ;;  %v123_v51 = vrot.slane %v505_v6, %v574_v34  ;;  %v277_v52 = vmul.f32 %v115_v33, %v34_v32  ;;  %v314_v53 = vsel %vm308_vm0, %v275_v35, 0.0 }
   0xf   :  { %v38_v54 = vunpack.c.h.bf16 %v581_v36  ;;  %v39_v55 = vunpack.c.l.bf16 %v591_v40  ;;  %v40_v56 = vunpack.c.h.bf16 %v591_v40  ;;  %v313_v57 = vadd.f32 %v312_v48, %v311_v47 }
  0x10   :  { %v41_v60 = vunpack.c.l.bf16 %v602_v45  ;;  %v127_v61 = vrot.slane %v586_v39, %v508_v7  ;;  %v278_v62 = vmul.f32 %v119_v41, %v35_v37  ;;  %v316_v63 = vsel %vm308_vm0, %v276_v42, 0.0 }
  0x11   :  { %v42_v1 = vunpack.c.h.bf16 %v602_v45  ;;  %v131_v2 = vrot.slane %v586_v39, %v511_v8  ;;  %v175_v3 = vrot.slane %v584_v38, %v514_v9  ;;  %v315_v6 = vadd.f32 %v314_v53, %v313_v57 }
  0x12   :  { %v279_v15 = vmul.f32 %v123_v51, %v36_v46  ;;  %v318_v16 = vsel %vm308_vm0, %v277_v52, 0.0  ;;  %v167_v19 = vrot.slane %v584_v38, %v508_v7  ;;  %v171_v21 = vrot.slane %v584_v38, %v511_v8 }
  0x13   :  { %v43_v23 = vunpack.c.l.bf16 %v620_v58  ;;  %v44_v25 = vunpack.c.h.bf16 %v620_v58  ;;  %v45_v27 = vunpack.c.l.bf16 %v625_v59  ;;  %v317_v29 = vadd.f32 %v316_v63, %v315_v6 }
  0x14   :  { %v135_v30 = vrot.slane %v586_v39, %v514_v9  ;;  %v179_v31 = vrot.slane %v584_v38, %v522_v11  ;;  %v280_v33 = vmul.f32 %v127_v61, %v37_v50  ;;  %v320_v35 = vsel %vm308_vm0, %v278_v62, 0.0 }
  0x15   :  { %v139_v41 = vrot.slane %v586_v39, %v522_v11  ;;  %v183_v42 = vrot.slane %v584_v38, %v536_v17  ;;  %v281_v43 = vmul.f32 %v131_v2, %v38_v54  ;;  %v319_v44 = vadd.f32 %v318_v16, %v317_v29 }
  0x16   :  { %v322_v47 = vsel %vm308_vm0, %v279_v15, 0.0  ;;  %v290_v48 = vmul.f32 %v167_v19, %v29_v12  ;;  %v291_v51 = vmul.f32 %v171_v21, %v30_v14  ;;  %v292_v52 = vmul.f32 %v175_v3, %v31_v18 }
  0x17   :  { %v46_v53 = vunpack.c.h.bf16 %v625_v59  ;;  %v143_v57 = vrot.slane %v586_v39, %v536_v17  ;;  %v147_v61 = vrot.slane %v586_v39, %v545_v22  ;;  %v321_v62 = vadd.f32 %v320_v35, %v319_v44 }
  0x18   :  { %v187_v63 = vrot.slane %v584_v38, %v545_v22  ;;  %v282_v12 = vmul.f32 %v135_v30, %v39_v55  ;;  %v324_v5 = vsel %vm308_vm0, %v280_v33, 0.0  ;;  %v293_v14 = vmul.f32 %v179_v31, %v32_v20  ;;  %v436_v31 = vld.sshfl [vmem:[%s794_s0 + $0x20] sm:$0x33 pattern:$0x75316420]  ;;  %s467_s0 = smov [#allocation2]  }
  0x19   :  { %v191_v18 = vrot.slane %v584_v38, %v562_v28  ;;  %v283_v2 = vmul.f32 %v139_v41, %v40_v56  ;;  %v323_v3 = vadd.f32 %v322_v47, %v321_v62  ;;  %v326_v6 = vsel %vm308_vm0, %v281_v43, 0.0  ;;  %s424_s13 = sshll.u32 %s467_s0, 4  ;;  %s425_s13 = int_to_ptr.vmem [resolvable:$true] %s424_s13 }
  0x1a   :  { %v294_v15 = vmul.f32 %v183_v42, %v33_v24  ;;  %v346_v16 = vsel %vm308_vm0, %v290_v48, 0.0  ;;  %v347_v19 = vsel %vm308_vm0, %v291_v51, 0.0  ;;  %v349_v21 = vsel %vm308_vm0, %v292_v52, 0.0  ;;  %s442_s14 = scalar_lea.vmem %s425_s13, 32  ;;  %p447_p1 = scmp.lt.s32.totalorder %s425_s13, %s425_s13 }
  0x1b   :  { %v151_v10 = vrot.slane %v586_v39, %v562_v28  ;;  %v195_v20 = vrot.slane %v584_v38, %v574_v34  ;;  %v325_v29 = vadd.f32 %v324_v5, %v323_v3  ;;  %v348_v30 = vadd.f32 %v347_v19, %v346_v16  ;;  %p443_p0 = scmp.ne.s32.totalorder %s425_s13, %s442_s14  ;;  %p448_p2 = scmp.lt.s32.totalorder %s442_s14, %s442_s14 }
  0x1c   :  { %v284_v24 = vmul.f32 %v143_v57, %v41_v60  ;;  %v328_v33 = vsel %vm308_vm0, %v282_v12, 0.0  ;;  %v295_v35 = vmul.f32 %v187_v63, %v34_v32  ;;  %v351_v41 = vsel %vm308_vm0, %v293_v14, 0.0 }
  0x1d   :  { %v155_v42 = vrot.slane %v586_v39, %v574_v34  ;;  %v285_v38 = vmul.f32 %v147_v61, %v42_v1  ;;  %v327_v43 = vadd.f32 %v326_v6, %v325_v29  ;;  %v350_v44 = vadd.f32 %v349_v21, %v348_v30  ;;  %p449_p3 = por %p448_p2, %p447_p1 }
  0x1e   :  { %v330_v47 = vsel %vm308_vm0, %v283_v2, 0.0  ;;  %v199_v48 = vrot.slane %v606_v49, %v508_v7  ;;  %v296_v51 = vmul.f32 %v191_v18, %v35_v37  ;;  %v353_v13 = vsel %vm308_vm0, %v294_v15, 0.0 }
  0x1f   :  { %v159_v32 = vrot.slane %v436_v31, %v508_v7  ;;  %v286_v39 = vmul.f32 %v151_v10, %v43_v23  ;;  %v329_v52 = vadd.f32 %v328_v33, %v327_v43  ;;  %v352_v57 = vadd.f32 %v351_v41, %v350_v44  ;;  %p450_p4 = pnand %p449_p3, %p443_p0 }
  0x20   :  { %v332_v61 = vsel %vm308_vm0, %v284_v24, 0.0  ;;  %v203_v62 = vrot.slane %v606_v49, %v511_v8  ;;  %v297_v63 = vmul.f32 %v195_v20, %v36_v46  ;;  %v355_v12 = vsel %vm308_vm0, %v295_v35, 0.0 }
  0x21   :  { %v163_v37 = vrot.slane %v436_v31, %v511_v8  ;;  %v287_v5 = vmul.f32 %v155_v42, %v44_v25  ;;  %v331_v14 = vadd.f32 %v330_v47, %v329_v52  ;;  %v354_v18 = vadd.f32 %v353_v13, %v352_v57 }
  0x22   :  { %v334_v2 = vsel %vm308_vm0, %v285_v38, 0.0  ;;  %v207_v3 = vrot.slane %v606_v49, %v514_v9  ;;  %v298_v6 = vmul.f32 %v199_v48, %v37_v50  ;;  %v357_v26 = vsel %vm308_vm0, %v296_v51, 0.0 }
  0x23   :  { %v288_v46 = vmul.f32 %v159_v32, %v45_v27  ;;  %v333_v15 = vadd.f32 %v332_v61, %v331_v14  ;;  %v356_v16 = vadd.f32 %v355_v12, %v354_v18  ;;  %v336_v19 = vsel %vm308_vm0, %v286_v39, 0.0 }
  0x24   :  { %v211_v21 = vrot.slane %v606_v49, %v522_v11  ;;  %v299_v10 = vmul.f32 %v203_v62, %v38_v54  ;;  %v359_v9 = vsel %vm308_vm0, %v297_v63, 0.0  ;;  %v289_v50 = vmul.f32 %v163_v37, %v46_v53 }
  0x25   :  { %v335_v20 = vadd.f32 %v334_v2, %v333_v15  ;;  %v358_v29 = vadd.f32 %v357_v26, %v356_v16  ;;  %v338_v30 = vsel %vm308_vm0, %v287_v5, 0.0  ;;  %v215_v24 = vrot.slane %v606_v49, %v536_v17 }
  0x26   :  { %v300_v33 = vmul.f32 %v207_v3, %v39_v55  ;;  %v361_v11 = vsel %vm308_vm0, %v298_v6, 0.0  ;;  %v340_v54 = vsel %vm308_vm0, %v288_v46, 0.0  ;;  %v219_v41 = vrot.slane %v606_v49, %v545_v22 }
  0x27   :  { %v337_v35 = vadd.f32 %v336_v19, %v335_v20  ;;  %v360_v36 = vadd.f32 %v359_v9, %v358_v29  ;;  %v301_v42 = vmul.f32 %v211_v21, %v40_v56  ;;  %v363_v38 = vsel %vm308_vm0, %v299_v10, 0.0 }
  0x28   :  { %v91_v44 = vcombine.high %v436_v31, %v436_v31  ;;  %v342_v47 = vsel %vm308_vm0, %v289_v50, 0.0  ;;  %v223_v55 = vrot.slane %v606_v49, %v562_v28  ;;  %v302_v48 = vmul.f32 %v215_v24, %v41_v60 }
  0x29   :  { %v339_v43 = vadd.f32 %v338_v30, %v337_v35  ;;  %v362_v17 = vadd.f32 %v361_v11, %v360_v36  ;;  %v365_v51 = vsel %vm308_vm0, %v300_v33, 0.0  ;;  %v227_v40 = vrot.slane %v606_v49, %v574_v34 }
  0x2a   :  { %v303_v56 = vmul.f32 %v219_v41, %v42_v1  ;;  %v367_v31 = vsel %vm308_vm0, %v301_v42, 0.0  ;;  %v231_v52 = vrot.slane %v91_v44, %v508_v7  ;;  %v304_v28 = vmul.f32 %v223_v55, %v43_v23 }
  0x2b   :  { %v341_v13 = vadd.f32 %v340_v54, %v339_v43  ;;  %v364_v22 = vadd.f32 %v363_v38, %v362_v17  ;;  %v369_v60 = vsel %vm308_vm0, %v302_v48, 0.0  ;;  %v235_v61 = vrot.slane %v91_v44, %v511_v8 }
  0x2c   :  { %v305_v34 = vmul.f32 %v227_v40, %v44_v25  ;;  %v371_v45 = vsel %vm308_vm0, %v303_v56, 0.0  ;;  %v306_v1 = vmul.f32 %v231_v52, %v45_v27  ;;  %v373_v7 = vsel %vm308_vm0, %v304_v28, 0.0 }
  0x2d   :  { %v343_v32 = vadd.f32 %v342_v47, %v341_v13  ;;  %v366_v39 = vadd.f32 %v365_v51, %v364_v22  ;;  %v307_v23 = vmul.f32 %v235_v61, %v46_v53  ;;  %v466_v14 = vmov 0  }
  0x2e   :  { %v375_v63 = vsel %vm308_vm0, %v305_v34, 0.0  ;;  %v377_v8 = vsel %vm308_vm0, %v306_v1, 0.0  ;;  %440 = vset.pattern.permute.xlu1 %v466_v14  ;;  %441 = vset.pattern.permute.xlu0 %v466_v14  ;;  %v404_v3 = vand.u32 127, %v92_v0  ;;  %vm413_vm1 = vcmask 1041409  }
  0x2f   :  { %344 = vadd.xlane.f32.xlu0 %v343_v32  ;;  %v368_v57 = vadd.f32 %v367_v31, %v366_v39  ;;  %v379_v58 = vsel %vm308_vm0, %v307_v23, 0.0  ;;  %vm416_vm2 = vcmask 41984  }
  0x30   :  { %v407_v6 = vsub.s32 %v404_v3, %v498_v4 }
  0x31   :  { %v370_v49 = vadd.f32 %v369_v60, %v368_v57 }
  0x33   :  { %v372_v62 = vadd.f32 %v371_v45, %v370_v49 }
  0x35   :  { %v374_v12 = vadd.f32 %v373_v7, %v372_v62 }
  0x37   :  { %v376_v37 = vadd.f32 %v375_v63, %v374_v12 }
  0x39   :  { %v378_v25 = vadd.f32 %v377_v8, %v376_v37 }
  0x3b   :  { %v380_v5 = vadd.f32 %v379_v58, %v378_v25 }
  0x3d   :  { %381 = vadd.xlane.f32.xlu0 %v380_v5 }
  0x74   :  { %v391_v27 = vpop.permute.xlu1 %390 }
  0xbc   :  { %v345_v18 = vpop.xlane.xlu0 %344 }
  0xbd   :  { %v393_v2 = vadd.f32 %v391_v27, %v345_v18 }
  0xbf   :  { %398 = vperm.xlu1 %440, %v393_v2  }
  0xca   :  { %v382_v59 = vpop.xlane.xlu0 %381 }
  0xcb   :  { %v394_v53 = vadd.f32 %v391_v27, %v382_v59 }
  0xcd   :  { %401 = vperm.xlu0 %441, %v394_v53  }
 0x13e   :  { %v399_v26 = vpop.permute.xlu1 %398 }
 0x13f   :  { %v408_v15 = vrot.slane %v399_v26, %v407_v6 }
 0x14c   :  { %v402_v46 = vpop.permute.xlu0 %401 }
 0x14d   :  { %v412_v16 = vrot.slane %v402_v46, %v407_v6 }
 0x14f   :  { %v414_v19 = vsel %vm413_vm1, %v412_v16, %v408_v15 }
 0x150   :  { %417 = vst.msk [vmem:[#allocation2] sm:$0x3] %vm416_vm2, %v414_v19 }
 0x151   :  { %453 = shalt.err (!%p450_p4)
}
 0x152   :  { %s454_s17 = scalar_lea.hbm %s797_s3, 32 }
 0x153   :  { %p455_p5 = scmp.ne.s32.totalorder %s797_s3, %s454_s17  ;;  %p458_p6 = scmp.lt.u32.totalorder %s454_s17, %s797_s3 }
 0x155   :  { %p460_p7 = pnand %p458_p6, %p455_p5 }
 0x157   :  { %463 = shalt.err (!%p460_p7)
}
 0x158   :  { %427 = dma.vmem_to_hbm [thread:$0]  %s425_s13, 32, %s797_s3, [#allocation3]  }
 0x159   :  { %464 = dma.done.wait [#allocation3], 32  }
 0x15a   :  { %465 = vsyncadd [#allocation3], 4294967264 }
 0x15b   :  { %431 = vsyncpa [#allocation3], 1 }

</bundles_post_ra>
